<compile_context>
chip_gen: v5e
topology: v5e:2x2
jax: 0.10.0
libtpu: 0.0.40
codegen_flags: <defaults>
</compile_context>

<pallas_src>
import jax
import jax.numpy as jnp
from jax.experimental import pallas as pl
from jax.experimental.pallas import tpu as pltpu


def _round_up(x, m):
    return ((x + m - 1) // m) * m


# --------------------------------------------------------------------------- #
# Kernels
# --------------------------------------------------------------------------- #
def _logreg_kernel_2d(x_ref, w_ref, b_ref, o_ref):
    # Full K in one MXU pass: no accumulator scratch, no init/finalize copy.
    # x_ref: (tm, K)  w_ref: (K, tn)  b_ref: (1, tn)  o_ref: (tm, tn)
    o_ref[...] = (
        jnp.dot(x_ref[...], w_ref[...], preferred_element_type=jnp.float32)
        + b_ref[...]
    ).astype(o_ref.dtype)


def _logreg_kernel_3d(x_ref, w_ref, b_ref, o_ref, acc_ref):
    # K tiled on grid axis 2 ("arbitrary"); f32 accumulator resident across it.
    k = pl.program_id(2)

    @pl.when(k == 0)
    def _():
        acc_ref[...] = jnp.zeros_like(acc_ref)

    acc_ref[...] += jnp.dot(
        x_ref[...], w_ref[...], preferred_element_type=jnp.float32
    )

    @pl.when(k == pl.num_programs(2) - 1)
    def _():
        # epilogue in f32 (safe on v5e's no-bf16 VPU), cast only at the store
        o_ref[...] = (acc_ref[...] + b_ref[...]).astype(o_ref.dtype)


# --------------------------------------------------------------------------- #
# Wrapper: one-time param prep (cold path) + jitted forward (hot path)
# --------------------------------------------------------------------------- #
def make_logreg(weight, bias, *, use_bf16=True):
    """Build a jitted forward(seq) computing LogReg: seq @ weight.T + bias.

    weight: (nb_classes, ft_in)   -- like torch nn.Linear.weight
    bias:   (nb_classes,)
    use_bf16: feed the MXU bf16 operands (f32 accumulation / bias / output).
              ~0.4% relative rounding of inputs; set False for exact f32.
    """
    C, K = weight.shape
    in_dtype = jnp.bfloat16 if use_bf16 else jnp.float32
    in_bytes = jnp.dtype(in_dtype).itemsize

    # ---- one-time K/C tiling plan (independent of batch size) -------------
    c_p = _round_up(C, 128)                        # lane-dense output / bias

    w_resident = (K * c_p * in_bytes <= (4 << 20)) and c_p <= 1024
    if w_resident:
        # Whole W^T stays in VMEM (constant index_map => single HBM read).
        tk, tn = K, c_p
    else:
        tn = 256 if c_p >= 256 else 128
        max_single_k = 4096 if use_bf16 else 2048
        if K <= max_single_k:
            tk = K
        else:
            # Prefer a tk that divides K so X never needs K padding per call.
            tk = 2048 if use_bf16 else 1024
            for cand in (tk, 1024, 512, 256, 128):
                if K % cand == 0:
                    tk = cand
                    break
    k_p = _round_up(K, tk)
    k_tiled = tk < k_p

    # ---- one-time (cold path) weight prep: transpose, pad, cast -----------
    w_t = jnp.pad(jnp.asarray(weight).T, ((0, k_p - K), (0, c_p - C)))
    w_t = w_t.astype(in_dtype)                                   # (k_p, c_p)
    b2d = jnp.pad(
        jnp.asarray(bias, jnp.float32).reshape(1, C), ((0, 0), (0, c_p - C))
    )                                                            # (1, c_p) f32

    kind = jax.devices()[0].device_kind.lower()
    is_v7 = "v7" in kind

    def forward(seq):
        N = seq.shape[0]
        assert seq.shape[1] == K, "feature dim mismatch"
        out_dtype = jnp.float32

        # ---- tm per TPU generation ----------------------------------------
        if is_v7:
            # Dual TensorCore: keep >=2 M tiles so both cores get work, and
            # respect the smaller (64 MiB physical) VMEM.
            tm = min(256, _round_up(max(-(-N // 2), 1), 8))
        else:
            # Single TensorCore (v5e/v6e): big tiles -> ~85% of HBM roofline.
            tm = min(512, _round_up(N, 8))
        tm = max(tm, 8)

        # ---- activations: narrow stream, no M padding ----------------------
        # (Callers should pass bf16 activations to avoid this extra cast pass.)
        x = seq.astype(in_dtype) if seq.dtype != in_dtype else seq
        if k_p != K:
            # Rare: K both huge and with no nice tk divisor; zero-pad K only
            # (required for accumulation correctness).
            x = jnp.pad(x, ((0, 0), (0, k_p - K)))

        grid_m = pl.cdiv(N, tm)
        grid_n = c_p // tn

        # ---- VMEM budget / scheduler cost hint ------------------------------
        acc_bytes = tm * tn * 4 if k_tiled else 0
        work_bytes = (
            2 * (tm * tk + tk * tn) * in_bytes
            + 2 * tm * tn * 4
            + 2 * tn * 4
            + acc_bytes
        )
        vmem_cap = (48 << 20) if is_v7 else (96 << 20)
        vmem_limit = int(min(vmem_cap, max(32 << 20, 2 * work_bytes)))

        cost = pl.CostEstimate(
            flops=2 * N * K * C,
            transcendentals=0,
            bytes_accessed=in_bytes * (N * K + K * C) + 4 * N * C,
        )

        if not k_tiled:
            out_p = pl.pallas_call(
                _logreg_kernel_2d,
                out_shape=jax.ShapeDtypeStruct((N, c_p), out_dtype),
                grid=(grid_m, grid_n),
                in_specs=[
                    pl.BlockSpec((tm, tk), lambda i, j: (i, 0)),   # X tile
                    pl.BlockSpec((tk, tn), lambda i, j: (0, j)),   # W^T tile
                    pl.BlockSpec((1, tn), lambda i, j: (0, j)),    # bias tile
                ],
                out_specs=pl.BlockSpec((tm, tn), lambda i, j: (i, j)),
                compiler_params=pltpu.CompilerParams(
                    dimension_semantics=("parallel", "parallel"),
                    vmem_limit_bytes=vmem_limit,
                ),
                cost_estimate=cost,
            )(x, w_t, b2d)
        else:
            grid_k = k_p // tk
            out_p = pl.pallas_call(
                _logreg_kernel_3d,
                out_shape=jax.ShapeDtypeStruct((N, c_p), out_dtype),
                grid=(grid_m, grid_n, grid_k),
                in_specs=[
                    pl.BlockSpec((tm, tk), lambda i, j, k: (i, k)),
                    pl.BlockSpec((tk, tn), lambda i, j, k: (k, j)),
                    pl.BlockSpec((1, tn), lambda i, j, k: (0, j)),
                ],
                out_specs=pl.BlockSpec((tm, tn), lambda i, j, k: (i, j)),
                scratch_shapes=[pltpu.VMEM((tm, tn), jnp.float32)],
                compiler_params=pltpu.CompilerParams(
                    dimension_semantics=("parallel", "parallel", "arbitrary"),
                    vmem_limit_bytes=vmem_limit,
                ),
                cost_estimate=cost,
            )(x, w_t, b2d)

        return out_p if c_p == C else out_p[:, :C]

    return jax.jit(forward)


def xavier_uniform(key, shape, dtype=jnp.float32):
    # torch.nn.init.xavier_uniform_ (gain=1): U(-a, a), a = sqrt(6/(fan_in+fan_out))
    fan_out, fan_in = shape  # nn.Linear weight shape is (out_features, in_features)
    a = jnp.sqrt(6.0 / (fan_in + fan_out))
    return jax.random.uniform(key, shape, dtype=dtype, minval=-a, maxval=a)


if __name__ == "__main__":
    key = jax.random.PRNGKey(0)
    k_x, k_w = jax.random.split(key)

    N = 8          # number of input rows (e.g. node embeddings)
    ft_in = 32     # input feature dim
    nb_classes = 16

    seq = jax.random.normal(k_x, (N, ft_in), dtype=jnp.float32)
    weight = xavier_uniform(k_w, (nb_classes, ft_in))   # like nn.Linear.weight
    bias = jnp.zeros((nb_classes,), dtype=jnp.float32)  # bias.data.fill_(0.0)

    forward = make_logreg(weight, bias, use_bf16=True)
    out = jax.block_until_ready(forward(seq))

    assert out.shape == (N, nb_classes)
    assert out.dtype == jnp.float32

    # Reference with the same bf16-operand / f32-accumulate numerics as the kernel.
    ref_bf16 = jnp.dot(
        seq.astype(jnp.bfloat16), weight.T.astype(jnp.bfloat16),
        preferred_element_type=jnp.float32,
    ) + bias
    assert jnp.allclose(out, ref_bf16, atol=2e-3, rtol=2e-3)

    # Sanity check against the exact f32 math (expected bf16-cast tolerance).
    ref_f32 = seq @ weight.T + bias
    assert jnp.allclose(out, ref_f32, atol=5e-2, rtol=5e-2)

    print("KERNEL_OK")
</pallas_src>

<mosaic_0001>
module attributes {stable_mosaic.version = 11 : i64} {
  func.func @_logreg_kernel_2d(%arg0: i32, %arg1: i32, %arg2: memref<8x32xbf16, #tpu.memory_space<vmem>>, %arg3: memref<32x128xbf16, #tpu.memory_space<vmem>>, %arg4: memref<1x128xf32, #tpu.memory_space<vmem>>, %arg5: memref<8x128xf32, #tpu.memory_space<vmem>>) attributes {dimension_semantics = [#tpu.dimension_semantics<parallel>, #tpu.dimension_semantics<parallel>], iteration_bounds = array<i64: 1, 1>, scalar_prefetch = 0 : i64, scratch_operands = 0 : i64, tpu.core_type = #tpu.core_type<tc>, window_params = [{transform_indices = @transform_0, window_bounds = array<i64: 8, 32>}, {transform_indices = @transform_1, window_bounds = array<i64: 32, 128>}, {transform_indices = @transform_2, window_bounds = array<i64: 1, 128>}, {transform_indices = @transform_3, window_bounds = array<i64: 8, 128>}]} {
    %c0 = arith.constant 0 : index
    %c0_0 = arith.constant 0 : index
    %0 = vector.load %arg2[%c0, %c0_0] : memref<8x32xbf16, #tpu.memory_space<vmem>>, vector<8x32xbf16>
    %c0_1 = arith.constant 0 : index
    %c0_2 = arith.constant 0 : index
    %1 = vector.load %arg3[%c0_1, %c0_2] : memref<32x128xbf16, #tpu.memory_space<vmem>>, vector<32x128xbf16>
    %cst = arith.constant dense<0.000000e+00> : vector<8x128xf32>
    %2 = tpu.matmul %0, %1, %cst {dimension_numbers = #tpu.dot_dimension_numbers<[1], [0], [0], [1], [0, 0, 1, 1], [], []>} : vector<8x32xbf16>, vector<32x128xbf16>, vector<8x128xf32> -> vector<8x128xf32>
    %c0_3 = arith.constant 0 : index
    %c0_4 = arith.constant 0 : index
    %3 = vector.load %arg4[%c0_3, %c0_4] : memref<1x128xf32, #tpu.memory_space<vmem>>, vector<1x128xf32>
    %4 = vector.broadcast %3 : vector<1x128xf32> to vector<8x128xf32>
    %5 = arith.addf %2, %4 : vector<8x128xf32>
    %c0_5 = arith.constant 0 : index
    %c0_6 = arith.constant 0 : index
    %6 = vector.load %arg5[%c0_5, %c0_6] : memref<8x128xf32, #tpu.memory_space<vmem>>, vector<8x128xf32>
    tpu.vector_store %arg5[%c0_5, %c0_6], %5 {strides = array<i32>} : memref<8x128xf32, #tpu.memory_space<vmem>>, vector<8x128xf32>,
    return
  }
  func.func @transform_0(%arg0: i32, %arg1: i32) -> (i32, i32) {
    %c0_i32 = arith.constant 0 : i32
    %c0_i32_0 = arith.constant 0 : i32
    return %arg0, %c0_i32 : i32, i32
  }
  func.func @transform_1(%arg0: i32, %arg1: i32) -> (i32, i32) {
    %c0_i32 = arith.constant 0 : i32
    %c0_i32_0 = arith.constant 0 : i32
    return %c0_i32, %arg1 : i32, i32
  }
  func.func @transform_2(%arg0: i32, %arg1: i32) -> (i32, i32) {
    %c0_i32 = arith.constant 0 : i32
    %c0_i32_0 = arith.constant 0 : i32
    return %c0_i32, %arg1 : i32, i32
  }
  func.func @transform_3(%arg0: i32, %arg1: i32) -> (i32, i32) {
    %c0_i32 = arith.constant 0 : i32
    return %arg0, %arg1 : i32, i32
  }
}

</mosaic_0001>

<bundles_post_ra>
// kernel: forward.1
= control target key start
LH: loop header
LB: loop body
LE: loop exit
PB: predicated region body
PF: predicated region fallthrough
CT: control target
= control target key end

     0   :  { %8 = vsyncpa [#allocation3], 0  ;;  %s192_s0 = inlined_call_operand.vmem [shape: bf16[8,32], index: 0, kind: input, shape index: {}]   ;;  %s193_s1 = inlined_call_operand.hbm [shape: bf16[32,128], index: 1, kind: input, shape index: {}]   ;;  %s194_s2 = inlined_call_operand.vmem [shape: f32[1,128], index: 2, kind: input, shape index: {}]   ;;  %s195_s3 = inlined_call_operand.hbm [shape: f32[8,128], index: 3, kind: output, shape index: {}]  }
   0x1   :  { %9 = vsyncpa [#allocation4], 0  ;;  %s16_s14 = sshll.u32 %s193_s1, 4  ;;  %s156_s15 = smov [#allocation2]   ;;  %s17_s14 = int_to_ptr.hbm [resolvable:$true] %s16_s14 }
   0x2   :  { %s18_s16 = sshll.u32 %s156_s15, 4  ;;  %s157_s17 = smov 64   ;;  %s19_s16 = int_to_ptr.vmem [resolvable:$true] %s18_s16 }
   0x3   :  { %s158_s18 = smov 4  }
   0x4   :  { %24 = dma.hbm_to_vmem [thread:$0]  %s17_s14, 256, %s19_s16, [#allocation3], %s157_s17, %s157_s17, %s158_s18  }
   0x5   :  { %152 = dma.done.wait [#allocation3], 256  }
   0x6   :  { %153 = vsyncadd [#allocation3], 4294967040  ;;  %v98_v0 = vld [vmem:[#allocation2 + $0x8] sm:$0xff]  ;;  %v97_v1 = vld [vmem:[#allocation2] sm:$0xff]  ;;  %vm53_vm0 = vcmask 261120   ;;  %s159_s22 = smov [#allocation5]  }
   0x7   :  { %63 = vmatpush.bf16.msra.mxu0 %v98_v0  ;;  %v32_v2 = vld [vmem:[%s192_s0] sm:$0xf]  ;;  %s76_s23 = sshll.u32 %s159_s22, 4  ;;  %s78_s26 = sshll.u32 %s195_s3, 4  ;;  %s77_s23 = int_to_ptr.vmem [resolvable:$true] %s76_s23  ;;  %s79_s26 = int_to_ptr.hbm [resolvable:$true] %s78_s26 }
   0x8   :  { %v103_v3 = vld [vmem:[%s194_s2] ss:$0 sm:$0xff] }
   0xb   :  { %64 = vmatpush.bf16.msra.mxu0 %v97_v1 }
   0xe   :  { %96 = vmatmul.msk.bf16.vlgmr.msra.gmra.mxu0 %vm53_vm0, %v32_v2 }
  0x8b   :  { %v66_v4 = vpop.f32.mrf.mxu0 }
  0x8c   :  { %v67_v5 = vadd.f32 %v103_v3, %v66_v4 }
  0x8e   :  { %70 = vst [vmem:[#allocation5] sm:$0xff] %v67_v5 }
  0x8f   :  { %81 = dma.vmem_to_hbm [thread:$0]  %s77_s23, 128, %s79_s26, [#allocation4]  }
  0x93   :  { %v68_v6 = vpop.f32.mrf.mxu0 }
  0x94   :  { %154 = dma.done.wait [#allocation4], 128  }
  0x95   :  { %155 = vsyncadd [#allocation4], 4294967168 }
  0x96   :  { %86 = vsyncpa [#allocation3], 1 }
  0x97   :  { %87 = vsyncpa [#allocation4], 1 }

</bundles_post_ra>
